<compile_context>
chip_gen: v5e
topology: v5e:2x2
jax: 0.10.0
libtpu: 0.0.40
codegen_flags: <defaults>
</compile_context>

<pallas_src>
import jax
import jax.numpy as jnp
from jax.experimental import pallas as pl
from jax.experimental.pallas import tpu as pltpu


# ----------------------------- Pallas kernel -------------------------------

def _proj_kernel(x_ref, w_ref, b_ref, o_ref):
    # x_ref: (1, K, tm)  bf16  K-major patch tile
    # w_ref: (tn, K)     bf16  flattened conv weight tile (native (E, K) order)
    # b_ref: (tn, 1)     f32   bias (broadcast along lanes)
    # o_ref: (1, tn, tm) f32   output tile, already in (E, M) layout
    acc = jnp.dot(w_ref[...], x_ref[0], preferred_element_type=jnp.float32)
    o_ref[0] = (acc + b_ref[...]).astype(o_ref.dtype)


def _round_up(x, m):
    return ((x + m - 1) // m) * m


def _choose_m_tiling(mb):
    """Pick (tm, padded Mb): big lane-dense tiles, minimal padding waste,
    >= 2 M-steps per batch when the problem is big enough (v7x pipelining)."""
    if mb <= 512:
        return mb, mb                     # single full-dim block per batch
    best = None
    for tm in (1024, 512, 256, 128):
        if mb // tm < 2:
            continue                      # keep >= 2 grid steps along M
        mb_p = _round_up(mb, tm)
        key = (mb_p - mb, -tm)            # minimize waste, then prefer big tm
        if best is None or key < best[0]:
            best = (key, tm, mb_p)
    return best[1], best[2]


def _choose_n_tile(e):
    """Keep E resident up to 2048; when tiling, keep tn >= 256 (256-wide MXU)."""
    if e <= 2048:
        return e
    for tn in (1024, 512, 256):
        if e % tn == 0:
            return tn
    return e


def _proj_matmul_t(patches_t, w, bias):
    """patches_t: (B, K, Mb) bf16; w: (E, K) bf16; bias: (E, 1) f32
    -> (B, E, Mb_padded) f32 (output already in channels-first layout)."""
    B, K, Mb = patches_t.shape
    E = w.shape[0]

    tm, Mb_p = _choose_m_tiling(Mb)
    if Mb_p != Mb:
        patches_t = jnp.pad(patches_t, ((0, 0), (0, 0), (0, Mb_p - Mb)))
    tn = _choose_n_tile(E)

    grid = (B, Mb_p // tm, E // tn)

    cost = pl.CostEstimate(
        flops=2 * B * Mb_p * K * E,
        transcendentals=0,
        bytes_accessed=B * K * Mb_p * 2 + E * K * 2 + B * E * Mb_p * 4 + E * 4,
    )

    return pl.pallas_call(
        _proj_kernel,
        out_shape=jax.ShapeDtypeStruct((B, E, Mb_p), jnp.float32),
        grid_spec=pltpu.PrefetchScalarGridSpec(
            num_scalar_prefetch=0,
            grid=grid,
            in_specs=[
                pl.BlockSpec((1, K, tm), lambda b, i, j: (b, 0, i)),
                pl.BlockSpec((tn, K), lambda b, i, j: (j, 0)),
                pl.BlockSpec((tn, 1), lambda b, i, j: (j, 0)),
            ],
            out_specs=pl.BlockSpec((1, tn, tm), lambda b, i, j: (b, j, i)),
        ),
        compiler_params=pltpu.CompilerParams(
            dimension_semantics=("parallel", "parallel", "parallel")),
        cost_estimate=cost,
    )(patches_t, w, bias)


# ------------------------------ PatchEmbed ---------------------------------

class PatchEmbed:
    """JAX/Pallas equivalent of the PyTorch PatchEmbed (norm_layer=None)."""

    def __init__(self, patch_size=4, in_chans=3, embed_dim=96, key=None):
        self.patch_size = (patch_size, patch_size, patch_size)
        self.in_chans = in_chans
        self.embed_dim = embed_dim
        if key is None:
            key = jax.random.PRNGKey(42)
        kw, kb = jax.random.split(key)
        p = patch_size
        fan_in = in_chans * p * p * p
        bound = 1.0 / jnp.sqrt(fan_in)
        # Conv3d weight: (embed_dim, in_chans, p, p, p); bias: (embed_dim,)
        self.weight = jax.random.uniform(
            kw, (embed_dim, in_chans, p, p, p), jnp.float32, -bound, bound)
        self.bias = jax.random.uniform(
            kb, (embed_dim,), jnp.float32, -bound, bound)

    def __call__(self, x):
        # x: (B, C, H, W, T)
        B, C, H, W, T = x.shape
        ph, pw, pt = self.patch_size

        # bf16 before the patch-extraction fusion: halves its HBM traffic.
        # (Intentional precision choice; MXU accumulates in f32.)
        x = x.astype(jnp.bfloat16)

        # Mirror the PyTorch forward's padding (it uses patch_size[0] for T
        # as well — identical here since the constructor forces a cubic patch).
        pad_w = (pw - W % pw) % pw
        pad_h = (ph - H % ph) % ph
        pad_t = (ph - T % ph) % ph
        if pad_w or pad_h or pad_t:
            x = jnp.pad(x, ((0, 0), (0, 0), (0, pad_h), (0, pad_w), (0, pad_t)))
        _, _, Hp, Wp, Tp = x.shape
        nH, nW, nT = Hp // ph, Wp // pw, Tp // pt

        K = C * ph * pw * pt
        Mb = nH * nW * nT

        # K-major patch extraction -> (B, K, Mb); K flattened in
        # (C, kh, kw, kt) order to match Conv3d weight flattening.
        xp = x.reshape(B, C, nH, ph, nW, pw, nT, pt)
        xp = jnp.transpose(xp, (0, 1, 3, 5, 7, 2, 4, 6))  # (B,C,ph,pw,pt,nH,nW,nT)
        patches_t = xp.reshape(B, K, Mb)

        w = self.weight.reshape(self.embed_dim, K).astype(jnp.bfloat16)  # (E, K)
        bias = self.bias.reshape(self.embed_dim, 1).astype(jnp.float32)  # (E, 1)

        out = _proj_matmul_t(patches_t, w, bias)            # (B, E, Mb_p) f32
        if out.shape[2] != Mb:
            out = out[:, :, :Mb]
        # Output is already channels-first -> final NCDHW is a pure reshape.
        return out.reshape(B, self.embed_dim, nH, nW, nT)
        # TODO(synk): norm_layer branch (LayerNorm over embed_dim) not needed
        # for the default construction (norm_layer=None).


# ------------------------------- reference ---------------------------------

def _reference(x, weight, bias, patch_size):
    """Pure-JAX reference conv with bf16-rounded inputs (kernel uses bf16)."""
    p = patch_size
    xr = x.astype(jnp.bfloat16).astype(jnp.float32)
    wr = weight.astype(jnp.bfloat16).astype(jnp.float32)
    out = jax.lax.conv_general_dilated(
        xr, wr,
        window_strides=(p, p, p), padding="VALID",
        dimension_numbers=("NCDHW", "OIDHW", "NCDHW"),
        preferred_element_type=jnp.float32)
    return out + bias.reshape(1, -1, 1, 1, 1)


if __name__ == "__main__":
    key = jax.random.PRNGKey(0)
    kx, kp = jax.random.split(key)

    B, C, H, W, T = 2, 4, 16, 16, 16
    patch = 4
    embed_dim = 32

    x = jax.random.normal(kx, (B, C, H, W, T), jnp.float32)

    pe = PatchEmbed(patch_size=patch, in_chans=C, embed_dim=embed_dim, key=kp)

    out = pe(x)
    out = jax.block_until_ready(out)

    ref = _reference(x, pe.weight, pe.bias, patch)
    assert out.shape == (B, embed_dim, H // patch, W // patch, T // patch), out.shape
    assert jnp.allclose(out, ref, atol=1e-2, rtol=1e-2), "mismatch vs reference"

    print("KERNEL_OK")
</pallas_src>

<mosaic_0001>
module attributes {stable_mosaic.version = 11 : i64} {
  func.func @_proj_kernel(%arg0: i32, %arg1: i32, %arg2: i32, %arg3: memref<1x256x64xbf16, #tpu.memory_space<vmem>>, %arg4: memref<32x256xbf16, #tpu.memory_space<vmem>>, %arg5: memref<32x1xf32, #tpu.memory_space<vmem>>, %arg6: memref<1x32x64xf32, #tpu.memory_space<vmem>>) attributes {dimension_semantics = [#tpu.dimension_semantics<parallel>, #tpu.dimension_semantics<parallel>, #tpu.dimension_semantics<parallel>], iteration_bounds = array<i64: 2, 1, 1>, scalar_prefetch = 0 : i64, scratch_operands = 0 : i64, tpu.core_type = #tpu.core_type<tc>, window_params = [{transform_indices = @transform_0, window_bounds = array<i64: 1, 256, 64>}, {transform_indices = @transform_1, window_bounds = array<i64: 32, 256>}, {transform_indices = @transform_2, window_bounds = array<i64: 32, 1>}, {transform_indices = @transform_3, window_bounds = array<i64: 1, 32, 64>}]} {
    %c0 = arith.constant 0 : index
    %c0_0 = arith.constant 0 : index
    %0 = vector.load %arg4[%c0, %c0_0] : memref<32x256xbf16, #tpu.memory_space<vmem>>, vector<32x256xbf16>
    %c0_1 = arith.constant 0 : index
    %c0_2 = arith.constant 0 : index
    %c0_3 = arith.constant 0 : index
    %1 = vector.load %arg3[%c0_1, %c0_2, %c0_3] : memref<1x256x64xbf16, #tpu.memory_space<vmem>>, vector<1x256x64xbf16>
    %2 = vector.shape_cast %1 : vector<1x256x64xbf16> to vector<256x64xbf16>
    %cst = arith.constant dense<0.000000e+00> : vector<32x64xf32>
    %3 = tpu.matmul %0, %2, %cst {dimension_numbers = #tpu.dot_dimension_numbers<[1], [0], [0], [1], [0, 0, 1, 1], [], []>} : vector<32x256xbf16>, vector<256x64xbf16>, vector<32x64xf32> -> vector<32x64xf32>
    %c0_4 = arith.constant 0 : index
    %c0_5 = arith.constant 0 : index
    %4 = vector.load %arg5[%c0_4, %c0_5] : memref<32x1xf32, #tpu.memory_space<vmem>>, vector<32x1xf32>
    %5 = vector.broadcast %4 : vector<32x1xf32> to vector<32x64xf32>
    %6 = arith.addf %3, %5 : vector<32x64xf32>
    %c0_6 = arith.constant 0 : index
    %c0_7 = arith.constant 0 : index
    %c0_8 = arith.constant 0 : index
    %7 = vector.load %arg6[%c0_6, %c0_7, %c0_8] : memref<1x32x64xf32, #tpu.memory_space<vmem>>, vector<1x32x64xf32>
    %8 = vector.shape_cast %7 : vector<1x32x64xf32> to vector<32x64xf32>
    %9 = vector.shape_cast %6 : vector<32x64xf32> to vector<1x32x64xf32>
    tpu.vector_store %arg6[%c0_6, %c0_7, %c0_8], %9 {strides = array<i32>} : memref<1x32x64xf32, #tpu.memory_space<vmem>>, vector<1x32x64xf32>,
    return
  }
  func.func @transform_0(%arg0: i32, %arg1: i32, %arg2: i32) -> (i32, i32, i32) {
    %c0_i32 = arith.constant 0 : i32
    %c0_i32_0 = arith.constant 0 : i32
    return %arg0, %c0_i32, %arg1 : i32, i32, i32
  }
  func.func @transform_1(%arg0: i32, %arg1: i32, %arg2: i32) -> (i32, i32) {
    %c0_i32 = arith.constant 0 : i32
    %c0_i32_0 = arith.constant 0 : i32
    return %arg2, %c0_i32 : i32, i32
  }
  func.func @transform_2(%arg0: i32, %arg1: i32, %arg2: i32) -> (i32, i32) {
    %c0_i32 = arith.constant 0 : i32
    %c0_i32_0 = arith.constant 0 : i32
    return %arg2, %c0_i32 : i32, i32
  }
  func.func @transform_3(%arg0: i32, %arg1: i32, %arg2: i32) -> (i32, i32, i32) {
    %c0_i32 = arith.constant 0 : i32
    return %arg0, %arg2, %arg1 : i32, i32, i32
  }
}

</mosaic_0001>

<bundles_post_ra>
// kernel: tpu_custom_call.1
= control target key start
LH: loop header
LB: loop body
LE: loop exit
PB: predicated region body
PF: predicated region fallthrough
CT: control target
= control target key end

     0   :  { %8 = vsyncpa [#allocation3], 0  ;;  %s1057_s0 = inlined_call_operand.vmem [shape: bf16[2,256,64], index: 0, kind: input, shape index: {}]   ;;  %s1058_s1 = inlined_call_operand.vmem [shape: bf16[32,256], index: 1, kind: input, shape index: {}]   ;;  %s1059_s2 = inlined_call_operand.vmem [shape: f32[32,1], index: 2, kind: input, shape index: {}]   ;;  %s1060_s3 = inlined_call_operand.hbm [shape: f32[2,32,64], index: 3, kind: output, shape index: {}]  }
   0x1   :  { %10 = vsyncpa [#allocation3 + $0x1], 0  ;;  %s898_s12 = smov 0   ;;  %s900_s13 = smov 0  }
   0x2   :  { %s902_s14 = smov 0   ;;  %s904_s15 = smov 0  }
   0x3   :  { %s906_s16 = smov 0   ;;  %s908_s17 = smov 0  }
   0x4 LB: > { %s602_s18 = sadd.s32 4294967295, %s873_s17   ;;  %s603_s19 = sadd.s32 4294967294, %s873_s17   ;;  %s873_s17 = sphi %s908_s17, %s16_s17   ;;  %s869_s16 = sphi %s906_s16, %s1067_s16   ;;  %s865_s15 = sphi %s904_s15, %s1066_s15   ;;  %s861_s14 = sphi %s902_s14, %s1065_s14   ;;  %s857_s13 = sphi %s900_s13, %s1064_s13   ;;  %s853_s12 = sphi %s898_s12, %s1063_s12  }
   0x5   : > { %s35_s20 = sadd.s32 1, %s869_s16  ;;  %s126_s21 = sadd.s32 1, %s861_s14 }
   0x6   : > { %p37_p0 = scmp.ge.s32.totalorder %s35_s20, 2  ;;  %p136_p1 = scmp.ne.s32.totalorder %s861_s14, %s857_s13 }
   0x7   : > { %p137_p2 = scmp.eq.s32.totalorder %s602_s18, 1  ;;  %p142_p3 = scmp.ne.s32.totalorder %s857_s13, %s853_s12 }
   0x8   : > { %s1069_s20 = smov (%p37_p0, %s35_s20), 0  ;;  %p143_p5 = scmp.eq.s32.totalorder %s603_s19, 1 }
   0x9   : > { %p938_p4 = por %p137_p2, %p136_p1  ;;  %s119_s23 = ssub.s32 %s869_s16, %s1069_s20 }
   0xa   : > { %p608_p6 = scmp.ge.s32.totalorder %s873_s17, 1  ;;  %p124_p7 = scmp.eq.s32.totalorder %s119_s23, 0 }
   0xb   : > { %p945_p8 = por %p143_p5, %p142_p3  ;;  %p191_p9 = scmp.lt.s32.totalorder %s873_s17, 3 }
   0xc   : > { %s951_s25 = scalar_select %p124_p7, %s861_s14, %s126_s21  }
   0xd   : > { %p192_p10 = pnand %p608_p6, %p191_p9 }
   0xe   : > { %p229_p11 = scmp.lt.s32.totalorder (!%p192_p10), %s865_s15, 1  ;;  %s226_s11 = sand.u32 (!%p192_p10), 1, %s857_s13  }
   0xf   : > { %195 = sbr.rel (%p192_p10) target bundleno = 204 (0xcc), region = 32  ;;  %s609_s18 = sshll.u32 (!%p192_p10), %s226_s11, 5 }
  0x10   : > { %s228_s19 = scalar_lea.vmem (!%p192_p10), [#allocation2], %s609_s18  ;;  %s718_s21 = sshll.u32 (!%p192_p10), %s865_s15, 5 }
  0x11   : > { %s486_s28 = sshll.u32 (!%p192_p10), %s228_s19, 4  ;;  %s815_s8 = scalar_lea.hbm (!%p192_p10), %s1060_s3, 64  ;;  %s487_s28 = int_to_ptr.vmem [resolvable:$true] %s486_s28 }
  0x14   : > { %s230_s26 = scalar_select %p229_p11, %s865_s15, 1  ;;  %v875_v4 = vmov 0   ;;  %v289_v7 = vld [vmem:[%s1059_s2 + $0x10] sm:$0xff]  ;;  %v287_v8 = vld [vmem:[%s1059_s2] sm:$0xff]  ;;  %v290_v11 = vld [vmem:[%s1059_s2 + $0x18] sm:$0xff]  ;;  %vm465_vm0 = vcmask 523264  }
  0x15   : > { %794 = vset.pattern.permute.xlu1 %v875_v4  ;;  %793 = vset.pattern.permute.xlu0 %v875_v4  ;;  %v288_v12 = vld [vmem:[%s1059_s2 + $0x8] sm:$0xff]  ;;  %v614_v19 = vld [vmem:[%s1058_s1] sm:$0xf]  ;;  %v622_v22 = vld [vmem:[%s1058_s1 + $0x10] sm:$0xf]  ;;  %s471_s15 = scalar_lea.sflag [#allocation3], %s226_s11 }
  0x16   : > { %s697_s27 = sshll.u32 %s230_s26, 7  ;;  %303 = vperm.xlu1 %794, %v289_v7   ;;  %293 = vperm.xlu0 %793, %v287_v8   ;;  %v699_v21 = vld [vmem:[%s1058_s1 + $0x4] sm:$0xf0]  ;;  %v701_v24 = vld [vmem:[%s1058_s1 + $0x14] sm:$0xf0] }
  0x17   : > { %s958_s30 = scalar_lea.vmem %s1057_s0, %s697_s27  ;;  %v698_v25 = vld [vmem:[%s1058_s1 + $0x4] sm:$0xf]  ;;  %v616_v26 = vld [vmem:[%s1058_s1 + $0x8] sm:$0xf0]  ;;  %v700_v27 = vld [vmem:[%s1058_s1 + $0x14] sm:$0xf]  ;;  %v615_v29 = vor.u32 %v699_v21, %v614_v19  ;;  %v623_v30 = vor.u32 %v701_v24, %v622_v22  ;;  %s485_s27 = scalar_lea.hbm %s1060_s3, %s718_s21 }
  0x18   : > { %v709_v0 = vld [vmem:[%s958_s30 + $0x38] sm:$0xff]  ;;  %v708_v2 = vld [vmem:[%s958_s30 + $0x30] sm:$0xff]  ;;  %v707_v5 = vld [vmem:[%s958_s30 + $0x28] sm:$0xff]  ;;  %v619_v31 = vor.u32 %v698_v25, %v616_v26  ;;  %s488_s29 = sshll.u32 %s485_s27, 4  ;;  %s489_s29 = int_to_ptr.hbm [resolvable:$true] %s488_s29 }
  0x19   : > { %v717_v1 = vld [vmem:[%s958_s30 + $0x78] sm:$0xff]  ;;  %427 = vmatpush.bf16.msra.mxu0 %v709_v0  ;;  %719 = vmatpush.bf16.msra.mxu2 %v709_v0  ;;  %v716_v3 = vld [vmem:[%s958_s30 + $0x70] sm:$0xff]  ;;  %v715_v6 = vld [vmem:[%s958_s30 + $0x68] sm:$0xff]  ;;  %s809_s4 = sshra.s32 %s489_s29, 4  ;;  %s810_s4 = int_to_ptr.hbm [resolvable:$true] %s809_s4 }
  0x1a   : > { %446 = vmatpush.bf16.msra.mxu1 %v717_v1  ;;  %727 = vmatpush.bf16.msra.mxu3 %v717_v1  ;;  %v706_v9 = vld [vmem:[%s958_s30 + $0x20] sm:$0xff]  ;;  %v705_v13 = vld [vmem:[%s958_s30 + $0x18] sm:$0xff]  ;;  %v704_v15 = vld [vmem:[%s958_s30 + $0x10] sm:$0xff]  ;;  %s811_s5 = scalar_lea.hbm %s810_s4, 32  ;;  %p816_p1 = scmp.lt.s32.totalorder %s810_s4, %s1060_s3 }
  0x1b   : > { %v714_v10 = vld [vmem:[%s958_s30 + $0x60] sm:$0xff]  ;;  %v713_v14 = vld [vmem:[%s958_s30 + $0x58] sm:$0xff]  ;;  %v712_v16 = vld [vmem:[%s958_s30 + $0x50] sm:$0xff]  ;;  %p812_p12 = scmp.ne.s32.totalorder %s810_s4, %s811_s5  ;;  %p817_p2 = scmp.lt.s32.totalorder %s815_s8, %s811_s5 }
  0x1c   : > { %v703_v17 = vld [vmem:[%s958_s30 + $0x8] sm:$0xff]  ;;  %v702_v20 = vld [vmem:[%s958_s30] sm:$0xff]  ;;  %v624_v28 = vld [vmem:[%s1058_s1 + $0x18] sm:$0xf0] }
  0x1d   : > { %428 = vmatpush.bf16.msra.mxu0 %v708_v2  ;;  %720 = vmatpush.bf16.msra.mxu2 %v708_v2  ;;  %v711_v18 = vld [vmem:[%s958_s30 + $0x48] sm:$0xff]  ;;  %v710_v23 = vld [vmem:[%s958_s30 + $0x40] sm:$0xff]  ;;  %v627_v32 = vor.u32 %v700_v27, %v624_v28  ;;  %p813_p13 = pnand %p812_p12, %p938_p4  ;;  %p818_p3 = por %p817_p2, %p816_p1 }
  0x1e   : > { %447 = vmatpush.bf16.msra.mxu1 %v716_v3  ;;  %728 = vmatpush.bf16.msra.mxu3 %v716_v3 }
  0x1f   : > { %308 = vperm.xlu1 %794, %v290_v11   ;;  %298 = vperm.xlu0 %793, %v288_v12   ;;  %p814_p0 = pneg %p813_p13 }
  0x21   : > { %429 = vmatpush.bf16.msra.mxu0 %v707_v5  ;;  %721 = vmatpush.bf16.msra.mxu2 %v707_v5  ;;  %p819_p5 = pnand %p818_p3, %p814_p0 }
  0x22   : > { %448 = vmatpush.bf16.msra.mxu1 %v715_v6  ;;  %729 = vmatpush.bf16.msra.mxu3 %v715_v6 }
  0x25   : > { %430 = vmatpush.bf16.msra.mxu0 %v706_v9  ;;  %722 = vmatpush.bf16.msra.mxu2 %v706_v9 }
  0x26   : > { %449 = vmatpush.bf16.msra.mxu1 %v714_v10  ;;  %730 = vmatpush.bf16.msra.mxu3 %v714_v10 }
  0x29   : > { %431 = vmatpush.bf16.msra.mxu0 %v705_v13  ;;  %723 = vmatpush.bf16.msra.mxu2 %v705_v13 }
  0x2a   : > { %450 = vmatpush.bf16.msra.mxu1 %v713_v14  ;;  %731 = vmatpush.bf16.msra.mxu3 %v713_v14 }
  0x2d   : > { %432 = vmatpush.bf16.msra.mxu0 %v704_v15  ;;  %724 = vmatpush.bf16.msra.mxu2 %v704_v15 }
  0x2e   : > { %451 = vmatpush.bf16.msra.mxu1 %v712_v16  ;;  %732 = vmatpush.bf16.msra.mxu3 %v712_v16 }
  0x31   : > { %433 = vmatpush.bf16.msra.mxu0 %v703_v17  ;;  %725 = vmatpush.bf16.msra.mxu2 %v703_v17 }
  0x32   : > { %452 = vmatpush.bf16.msra.mxu1 %v711_v18  ;;  %733 = vmatpush.bf16.msra.mxu3 %v711_v18 }
  0x35   : > { %434 = vmatpush.bf16.msra.mxu0 %v702_v20  ;;  %726 = vmatpush.bf16.msra.mxu2 %v702_v20 }
  0x36   : > { %453 = vmatpush.bf16.msra.mxu1 %v710_v23  ;;  %734 = vmatpush.bf16.msra.mxu3 %v710_v23 }
  0x38   : > { %435 = vmatmul.bf16.vlgmr.msra.gmra.mxu0 %v615_v29  ;;  %440 = vmatmul.bf16.vlgmr.msra.gmra.mxu2 %v623_v30 }
  0x39   : > { %454 = vmatmul.bf16.vlgmr.msra.gmra.mxu1 %v619_v31  ;;  %459 = vmatmul.bf16.vlgmr.msra.gmra.mxu3 %v627_v32 }
  0x88   : > { %v294_v33 = vpop.permute.xlu0 %293  ;;  %v304_v38 = vpop.permute.xlu1 %303 }
  0x91   : > { %v299_v42 = vpop.permute.xlu0 %298  ;;  %v309_v48 = vpop.permute.xlu1 %308 }
  0xb5   : > { %v436_v34 = vpop.f32.mrf.mxu0 }
  0xb6   : > { %v437_v35 = vadd.f32 %v436_v34, %v294_v33  ;;  %v455_v36 = vpop.f32.mrf.mxu1 }
  0xb8   : > { %v456_v37 = vadd.f32 %v455_v36, %v437_v35 }
  0xba   : > { %466 = vst.msk [vmem:[%s228_s19] sm:$0xff] %vm465_vm0, %v456_v37 }
  0xbb   : > { %v441_v39 = vpop.f32.mrf.mxu2 }
  0xbc   : > { %v442_v40 = vadd.f32 %v441_v39, %v304_v38  ;;  %v460_v41 = vpop.f32.mrf.mxu3 }
  0xbd   : > { %v438_v43 = vpop.f32.mrf.mxu0 }
  0xbe   : > { %v461_v44 = vadd.f32 %v460_v41, %v442_v40  ;;  %v439_v45 = vadd.f32 %v438_v43, %v299_v42  ;;  %v457_v46 = vpop.f32.mrf.mxu1 }
  0xc0   : > { %468 = vst.msk [vmem:[%s228_s19 + $0x10] sm:$0xff] %vm465_vm0, %v461_v44  ;;  %v458_v47 = vadd.f32 %v457_v46, %v439_v45 }
  0xc2   : > { %467 = vst.msk [vmem:[%s228_s19 + $0x8] sm:$0xff] %vm465_vm0, %v458_v47 }
  0xc3   : > { %v443_v49 = vpop.f32.mrf.mxu2 }
  0xc4   : > { %v444_v50 = vadd.f32 %v443_v49, %v309_v48  ;;  %v462_v51 = vpop.f32.mrf.mxu3 }
  0xc6   : > { %v463_v52 = vadd.f32 %v462_v51, %v444_v50 }
  0xc8   : > { %469 = vst.msk [vmem:[%s228_s19 + $0x18] sm:$0xff] %vm465_vm0, %v463_v52 }
  0xc9   : > { %822 = shalt.err (!%p819_p5)
}
  0xca   : > { %s876_s10 = smov 128   ;;  %s877_s11 = smov 8  }
  0xcb   : > { %735 = dma.vmem_to_hbm [thread:$0]  (%p938_p4), %s487_s28, 512, %s489_s29, %s471_s15, %s876_s10, %s876_s10, %s877_s11  }
  0xcc PF: > { %p741_p6 = scmp.ge.s32.totalorder %s873_s17, 2  ;;  %s503_s18 = sand.u32 1, %s853_s12  }
  0xcd   : > { %s504_s19 = scalar_lea.sflag [#allocation3], %s503_s18 }
  0xce   : > { %p738_p7 = pnand %p741_p6, %p945_p8 }
  0xd0   : > { %p739_p9 = pneg %p738_p7 }
  0xd2   : > { %848 = dma.done.wait (%p739_p9), %s504_s19, 512  }
  0xd3   : > { %850 = vsyncadd (%p739_p9), %s504_s19, 4294966784  ;;  %s16_s17 = sadd.s32 1, %s873_s17   ;;  %s1063_s12 = smov %s857_s13 }
  0xd4   : > { %p13_p10 = scmp.ge.s32.totalorder %s16_s17, 4   ;;  %s1064_s13 = smov %s861_s14 }
  0xd5   : > { %s1065_s14 = smov %s951_s25  ;;  %s1066_s15 = smov %s869_s16 }
  0xd6   : > { %s1067_s16 = smov %s1069_s20  ;;  %15 = sbr.rel (!%p13_p10) target bundleno = 4 (0x4), region = 73 }
  0xdb   :  { %510 = vsyncpa [#allocation3], 1 }
  0xdc   :  { %512 = vsyncpa [#allocation3 + $0x1], 1 }

</bundles_post_ra>
